<compile_context>
chip_gen: v7x
topology: tpu7x:2x2x1
jax: 0.10.0
libtpu: 0.0.40
codegen_flags: <defaults>
</compile_context>

<pallas_src>
import numpy as np
import jax
import jax.numpy as jnp
from jax.experimental import pallas as pl
from jax.experimental.pallas import tpu as pltpu

EGS_FACTOR = 0.1


def _decode_kernel(sgn_ref, scl_ref, mx_ref, my_ref, gxs_ref, gys_ref, x_ref, o_ref):
    """One dense (TR, HW) tile of the YOLO head decode.

    sgn/scl/mx/my : (TR, 1)  per-row constants
    gxs/gys       : (1, HW)  per-lane (spatial) offsets, pre-scaled
    x/o           : (TR, HW) raw head values / decoded values
    """
    t = x_ref[...]                                    # (TR, HW)
    sgn = sgn_ref[...]                                # (TR, 1): +1 for w/h rows, -1 otherwise
    e = jnp.exp(sgn * t)                              # exp(t) for w/h rows, exp(-t) otherwise
    is_wh = jnp.broadcast_to(sgn, t.shape) > 0.0
    # w/h rows keep exp(t); all other rows become sigmoid(t) = 1 / (1 + exp(-t)).
    res = jnp.where(is_wh, e, 1.0 / (1.0 + e))
    gx = jnp.broadcast_to(gxs_ref[...], t.shape)      # (TR, HW)
    gy = jnp.broadcast_to(gys_ref[...], t.shape)
    o_ref[...] = res * scl_ref[...] + (mx_ref[...] * gx + my_ref[...] * gy)


def _pick_block_rows(R, HW, target_bytes=4 << 20):
    """Largest row tile (multiple of 8, or all rows) with ~target_bytes per buffer."""
    rows = max(1, target_bytes // (HW * 4))
    if rows >= R:
        return R
    return max(8, (rows // 8) * 8)


def head_decoder(yolo_head, anchors, num_classes, img_size):
    """JAX/Pallas equivalent of HeadDecoder.forward.

    yolo_head: (B, A*(5+num_classes), H, W) float   (NCHW, like PyTorch)
    returns:   (B, A*H*W, 5+num_classes) float32
    """
    anchors = np.asarray(anchors, dtype=np.float64)
    A = anchors.shape[0]
    C = 5 + num_classes
    B, Ctot, H, W = yolo_head.shape
    assert Ctot == A * C, "channel dim must equal num_anchors*(5+num_classes)"

    HW = H * W
    R = B * A * C

    grid_h = img_size[1] / H
    grid_w = img_size[0] / W
    # NOTE: reference divides both anchor dims by grid_width (faithful reproduction).
    scaled = anchors / np.array([grid_w, grid_w])

    E = EGS_FACTOR
    # --- per-row constants (host-side, float64 then cast) -----------------------------
    c_idx = np.tile(np.arange(C), B * A)              # channel index of each row
    a_idx = np.tile(np.repeat(np.arange(A), C), B)    # anchor index of each row

    sgn = np.where((c_idx == 2) | (c_idx == 3), 1.0, -1.0)
    scl = np.ones(R, dtype=np.float64)
    scl[c_idx == 0] = (1.0 + E) * grid_w
    scl[c_idx == 1] = (1.0 + E) * grid_h
    scl[c_idx == 2] = scaled[a_idx[c_idx == 2], 0] * grid_w
    scl[c_idx == 3] = scaled[a_idx[c_idx == 3], 1] * grid_h
    mx = (c_idx == 0).astype(np.float64)
    my = (c_idx == 1).astype(np.float64)

    sgn = jnp.asarray(sgn.reshape(R, 1), jnp.float32)
    scl = jnp.asarray(scl.reshape(R, 1), jnp.float32)
    mx = jnp.asarray(mx.reshape(R, 1), jnp.float32)
    my = jnp.asarray(my.reshape(R, 1), jnp.float32)

    # --- per-lane (spatial) constants: (grid_x - 0.5*EGS)*gw, (grid_y - 0.5*EGS)*gh ---
    gxs = (np.tile(np.arange(W, dtype=np.float64), H) - 0.5 * E) * grid_w
    gys = (np.repeat(np.arange(H, dtype=np.float64), W) - 0.5 * E) * grid_h
    gxs = jnp.asarray(gxs.reshape(1, HW), jnp.float32)
    gys = jnp.asarray(gys.reshape(1, HW), jnp.float32)

    # --- data: free reshape to (R, HW); HW is the dense lane dimension ----------------
    data = yolo_head.astype(jnp.float32).reshape(R, HW)

    TR = _pick_block_rows(R, HW)
    grid = (pl.cdiv(R, TR),)

    out2d = pl.pallas_call(
        _decode_kernel,
        out_shape=jax.ShapeDtypeStruct((R, HW), jnp.float32),
        grid=grid,
        in_specs=[
            pl.BlockSpec((TR, 1), lambda i: (i, 0)),    # sgn
            pl.BlockSpec((TR, 1), lambda i: (i, 0)),    # scl
            pl.BlockSpec((TR, 1), lambda i: (i, 0)),    # mx
            pl.BlockSpec((TR, 1), lambda i: (i, 0)),    # my
            pl.BlockSpec((1, HW), lambda i: (0, 0)),    # gxs
            pl.BlockSpec((1, HW), lambda i: (0, 0)),    # gys
            pl.BlockSpec((TR, HW), lambda i: (i, 0)),   # head data
        ],
        out_specs=pl.BlockSpec((TR, HW), lambda i: (i, 0)),
        compiler_params=pltpu.CompilerParams(
            dimension_semantics=("parallel",),
            vmem_limit_bytes=48 * 1024 * 1024,
        ),
    )(sgn, scl, mx, my, gxs, gys, data)

    # Layout glue (XLA): (B*A*C, HW) -> (B, A*HW, C).
    out = out2d.reshape(B, A, C, HW).transpose(0, 1, 3, 2).reshape(B, A * HW, C)
    return out


def _reference_decoder(yolo_head, anchors, num_classes, img_size):
    """Pure-jnp port of the PyTorch forward, used only for verification."""
    anchors = np.asarray(anchors, dtype=np.float64)
    A = anchors.shape[0]
    C = 5 + num_classes
    B, _, H, W = yolo_head.shape
    grid_h = img_size[1] / H
    grid_w = img_size[0] / W
    scaled = anchors / np.array([grid_w, grid_w])

    inf = yolo_head.reshape(B, A, C, H, W).transpose(0, 1, 3, 4, 2)  # (B,A,H,W,C)
    x = (1 + EGS_FACTOR) * jax.nn.sigmoid(inf[..., 0]) - 0.5 * EGS_FACTOR
    y = (1 + EGS_FACTOR) * jax.nn.sigmoid(inf[..., 1]) - 0.5 * EGS_FACTOR
    w = inf[..., 2]
    h = inf[..., 3]
    conf = jax.nn.sigmoid(inf[..., 4])
    cls = jax.nn.sigmoid(inf[..., 5:])

    gx = jnp.broadcast_to(jnp.arange(W, dtype=jnp.float32)[None, :], (H, W))
    gy = jnp.broadcast_to(jnp.arange(H, dtype=jnp.float32)[:, None], (H, W))
    gx = jnp.broadcast_to(gx, x.shape)
    gy = jnp.broadcast_to(gy, y.shape)
    aw = jnp.asarray(scaled[:, 0], jnp.float32)[None, :, None, None]
    ah = jnp.asarray(scaled[:, 1], jnp.float32)[None, :, None, None]

    boxes = jnp.stack(
        [x + gx, y + gy, jnp.exp(w) * aw, jnp.exp(h) * ah], axis=-1
    )  # (B,A,H,W,4)
    scale = jnp.asarray([grid_w, grid_h, grid_w, grid_h], jnp.float32)
    out = jnp.concatenate(
        [
            boxes.reshape(B, -1, 4) * scale,
            conf.reshape(B, -1, 1),
            cls.reshape(B, -1, num_classes),
        ],
        axis=-1,
    )
    return out


if __name__ == "__main__":
    # Small, deterministic example consistent with the module:
    # B=2, num_anchors=3, num_classes=4 -> channels = 3*(5+4)=27, H=W=8, img=(128,128)
    B, H, W = 2, 8, 8
    num_classes = 4
    anchors = [[10.0, 13.0], [16.0, 30.0], [33.0, 23.0]]
    img_size = (128, 128)
    Ctot = len(anchors) * (5 + num_classes)

    key = jax.random.PRNGKey(0)
    yolo_head = jax.random.normal(key, (B, Ctot, H, W), dtype=jnp.float32)

    out = head_decoder(yolo_head, anchors, num_classes, img_size)
    out = jax.block_until_ready(out)

    ref = _reference_decoder(yolo_head, anchors, num_classes, img_size)
    np.testing.assert_allclose(np.asarray(out), np.asarray(ref), rtol=1e-4, atol=1e-4)
    assert out.shape == (B, len(anchors) * H * W, 5 + num_classes)

    print("KERNEL_OK")
</pallas_src>

<mosaic_0001>
module attributes {stable_mosaic.version = 11 : i64} {
  func.func @_decode_kernel(%arg0: i32, %arg1: memref<54x1xf32, #tpu.memory_space<vmem>>, %arg2: memref<54x1xf32, #tpu.memory_space<vmem>>, %arg3: memref<54x1xf32, #tpu.memory_space<vmem>>, %arg4: memref<54x1xf32, #tpu.memory_space<vmem>>, %arg5: memref<1x64xf32, #tpu.memory_space<vmem>>, %arg6: memref<1x64xf32, #tpu.memory_space<vmem>>, %arg7: memref<54x64xf32, #tpu.memory_space<vmem>>, %arg8: memref<54x64xf32, #tpu.memory_space<vmem>>) attributes {dimension_semantics = [#tpu.dimension_semantics<parallel>], iteration_bounds = array<i64: 1>, scalar_prefetch = 0 : i64, scratch_operands = 0 : i64, tpu.core_type = #tpu.core_type<tc>, window_params = [{transform_indices = @transform_0, window_bounds = array<i64: 54, 1>}, {transform_indices = @transform_1, window_bounds = array<i64: 54, 1>}, {transform_indices = @transform_2, window_bounds = array<i64: 54, 1>}, {transform_indices = @transform_3, window_bounds = array<i64: 54, 1>}, {pipeline_mode = #tpu.pipeline_mode<synchronous>, transform_indices = @transform_4, window_bounds = array<i64: 1, 64>}, {pipeline_mode = #tpu.pipeline_mode<synchronous>, transform_indices = @transform_5, window_bounds = array<i64: 1, 64>}, {transform_indices = @transform_6, window_bounds = array<i64: 54, 64>}, {transform_indices = @transform_7, window_bounds = array<i64: 54, 64>}]} {
    %c0 = arith.constant 0 : index
    %c0_0 = arith.constant 0 : index
    %0 = vector.load %arg7[%c0, %c0_0] : memref<54x64xf32, #tpu.memory_space<vmem>>, vector<54x64xf32>
    %c0_1 = arith.constant 0 : index
    %c0_2 = arith.constant 0 : index
    %1 = vector.load %arg1[%c0_1, %c0_2] : memref<54x1xf32, #tpu.memory_space<vmem>>, vector<54x1xf32>
    %2 = vector.broadcast %1 : vector<54x1xf32> to vector<54x64xf32>
    %3 = arith.mulf %2, %0 : vector<54x64xf32>
    %4 = math.exp %3 : vector<54x64xf32>
    %5 = vector.shape_cast %1 : vector<54x1xf32> to vector<54x1xf32>
    %6 = vector.broadcast %5 : vector<54x1xf32> to vector<54x64xf32>
    %cst = arith.constant 0.000000e+00 : f32
    %7 = vector.broadcast %cst : f32 to vector<54x64xf32>
    %8 = arith.cmpf ogt, %6, %7 : vector<54x64xf32>
    %cst_3 = arith.constant 1.000000e+00 : f32
    %9 = vector.broadcast %cst_3 : f32 to vector<54x64xf32>
    %10 = arith.addf %9, %4 : vector<54x64xf32>
    %cst_4 = arith.constant 1.000000e+00 : f32
    %11 = vector.broadcast %cst_4 : f32 to vector<54x64xf32>
    %12 = arith.divf %11, %10 : vector<54x64xf32>
    %13 = arith.select %8, %4, %12 : vector<54x64xi1>, vector<54x64xf32>
    %c0_5 = arith.constant 0 : index
    %c0_6 = arith.constant 0 : index
    %14 = vector.load %arg5[%c0_5, %c0_6] : memref<1x64xf32, #tpu.memory_space<vmem>>, vector<1x64xf32>
    %15 = vector.shape_cast %14 : vector<1x64xf32> to vector<1x64xf32>
    %16 = vector.broadcast %15 : vector<1x64xf32> to vector<54x64xf32>
    %c0_7 = arith.constant 0 : index
    %c0_8 = arith.constant 0 : index
    %17 = vector.load %arg6[%c0_7, %c0_8] : memref<1x64xf32, #tpu.memory_space<vmem>>, vector<1x64xf32>
    %18 = vector.shape_cast %17 : vector<1x64xf32> to vector<1x64xf32>
    %19 = vector.broadcast %18 : vector<1x64xf32> to vector<54x64xf32>
    %c0_9 = arith.constant 0 : index
    %c0_10 = arith.constant 0 : index
    %20 = vector.load %arg2[%c0_9, %c0_10] : memref<54x1xf32, #tpu.memory_space<vmem>>, vector<54x1xf32>
    %21 = vector.broadcast %20 : vector<54x1xf32> to vector<54x64xf32>
    %22 = arith.mulf %13, %21 : vector<54x64xf32>
    %c0_11 = arith.constant 0 : index
    %c0_12 = arith.constant 0 : index
    %23 = vector.load %arg3[%c0_11, %c0_12] : memref<54x1xf32, #tpu.memory_space<vmem>>, vector<54x1xf32>
    %24 = vector.broadcast %23 : vector<54x1xf32> to vector<54x64xf32>
    %25 = arith.mulf %24, %16 : vector<54x64xf32>
    %c0_13 = arith.constant 0 : index
    %c0_14 = arith.constant 0 : index
    %26 = vector.load %arg4[%c0_13, %c0_14] : memref<54x1xf32, #tpu.memory_space<vmem>>, vector<54x1xf32>
    %27 = vector.broadcast %26 : vector<54x1xf32> to vector<54x64xf32>
    %28 = arith.mulf %27, %19 : vector<54x64xf32>
    %29 = arith.addf %25, %28 : vector<54x64xf32>
    %30 = arith.addf %22, %29 : vector<54x64xf32>
    %c0_15 = arith.constant 0 : index
    %c0_16 = arith.constant 0 : index
    %31 = vector.load %arg8[%c0_15, %c0_16] : memref<54x64xf32, #tpu.memory_space<vmem>>, vector<54x64xf32>
    tpu.vector_store %arg8[%c0_15, %c0_16], %30 {strides = array<i32>} : memref<54x64xf32, #tpu.memory_space<vmem>>, vector<54x64xf32>,
    return
  }
  func.func @transform_0(%arg0: i32) -> (i32, i32) {
    %c0_i32 = arith.constant 0 : i32
    %c0_i32_0 = arith.constant 0 : i32
    return %arg0, %c0_i32 : i32, i32
  }
  func.func @transform_1(%arg0: i32) -> (i32, i32) {
    %c0_i32 = arith.constant 0 : i32
    %c0_i32_0 = arith.constant 0 : i32
    return %arg0, %c0_i32 : i32, i32
  }
  func.func @transform_2(%arg0: i32) -> (i32, i32) {
    %c0_i32 = arith.constant 0 : i32
    %c0_i32_0 = arith.constant 0 : i32
    return %arg0, %c0_i32 : i32, i32
  }
  func.func @transform_3(%arg0: i32) -> (i32, i32) {
    %c0_i32 = arith.constant 0 : i32
    %c0_i32_0 = arith.constant 0 : i32
    return %arg0, %c0_i32 : i32, i32
  }
  func.func @transform_4(%arg0: i32) -> (i32, i32) {
    %c0_i32 = arith.constant 0 : i32
    %c0_i32_0 = arith.constant 0 : i32
    %c0_i32_1 = arith.constant 0 : i32
    return %c0_i32, %c0_i32_0 : i32, i32
  }
  func.func @transform_5(%arg0: i32) -> (i32, i32) {
    %c0_i32 = arith.constant 0 : i32
    %c0_i32_0 = arith.constant 0 : i32
    %c0_i32_1 = arith.constant 0 : i32
    return %c0_i32, %c0_i32_0 : i32, i32
  }
  func.func @transform_6(%arg0: i32) -> (i32, i32) {
    %c0_i32 = arith.constant 0 : i32
    %c0_i32_0 = arith.constant 0 : i32
    return %arg0, %c0_i32 : i32, i32
  }
  func.func @transform_7(%arg0: i32) -> (i32, i32) {
    %c0_i32 = arith.constant 0 : i32
    %c0_i32_0 = arith.constant 0 : i32
    return %arg0, %c0_i32 : i32, i32
  }
}

</mosaic_0001>

<bundles_post_ra>
// kernel: tpu_custom_call.1
= control target key start
LH: loop header
LB: loop body
LE: loop exit
PB: predicated region body
PF: predicated region fallthrough
CT: control target
= control target key end

     0   :  { %v392_v2 = vmov 0   ;;  %s621_s0 = inlined_call_operand.vmem [shape: f32[54,1], index: 0, kind: input, shape index: {}]   ;;  %s622_s1 = inlined_call_operand.vmem [shape: f32[54,1], index: 1, kind: input, shape index: {}]   ;;  %s623_s2 = inlined_call_operand.vmem [shape: f32[54,1], index: 2, kind: input, shape index: {}]   ;;  %s624_s3 = inlined_call_operand.vmem [shape: f32[54,1], index: 3, kind: input, shape index: {}]   ;;  %s625_s4 = inlined_call_operand.vmem [shape: f32[1,64], index: 4, kind: input, shape index: {}]   ;;  %s626_s5 = inlined_call_operand.vmem [shape: f32[1,64], index: 5, kind: input, shape index: {}]   ;;  %s627_s6 = inlined_call_operand.vmem [shape: f32[54,64], index: 6, kind: input, shape index: {}]   ;;  %s628_s7 = inlined_call_operand.hbm [shape: f32[54,64], index: 7, kind: output, shape index: {}]  }
   0x1   :  { %v36_v0 = vld [vmem:[%s621_s0 + $0x10] sm:$0xff]  ;;  %v34_v1 = vld [vmem:[%s621_s0] sm:$0xff]  ;;  %339 = vset.pattern.permute.xlu1 %v392_v2  ;;  %338 = vset.pattern.permute.xlu0 %v392_v2  ;;  %v37_v3 = vld [vmem:[%s621_s0 + $0x18] sm:$0xff] }
   0x2   :  { %53 = vperm.xlu1 %339, %v36_v0   ;;  %43 = vperm.xlu0 %338, %v34_v1   ;;  %v35_v4 = vld [vmem:[%s621_s0 + $0x8] sm:$0xff]  ;;  %v38_v6 = vld [vmem:[%s621_s0 + $0x20] sm:$0xff]  ;;  %v40_v8 = vld [vmem:[%s621_s0 + $0x30] sm:$0x3f] }
   0x3   :  { %v39_v5 = vld [vmem:[%s621_s0 + $0x28] sm:$0xff]  ;;  %v146_v7 = vld [vmem:[%s622_s1] sm:$0xff] }
   0x6   :  { %58 = vperm.xlu1 %339, %v37_v3   ;;  %48 = vperm.xlu0 %338, %v35_v4  }
   0xa   :  { %68 = vperm.xlu1 %339, %v39_v5   ;;  %63 = vperm.xlu0 %338, %v38_v6  }
   0xb   :  { %12 = vsyncpa [#allocation3], 0  ;;  %v148_v9 = vld [vmem:[%s622_s1 + $0x10] sm:$0xff]  ;;  %v147_v10 = vld [vmem:[%s622_s1 + $0x8] sm:$0xff]  ;;  %vm307_vm2 = vcmask 523264   ;;  %vm314_vm8 = vcmask 521216  }
   0xc   :  { %v196_v11 = vld [vmem:[%s623_s2 + $0x8] sm:$0xff]  ;;  %v195_v12 = vld [vmem:[%s623_s2] sm:$0xff]  ;;  %v198_v13 = vld [vmem:[%s623_s2 + $0x18] sm:$0xff] }
   0xd   :  { %v197_v14 = vld [vmem:[%s623_s2 + $0x10] sm:$0xff]  ;;  %v200_v15 = vld [vmem:[%s623_s2 + $0x28] sm:$0xff]  ;;  %v199_v16 = vld [vmem:[%s623_s2 + $0x20] sm:$0xff] }
   0xe   :  { %155 = vperm.xlu1 %339, %v146_v7   ;;  %73 = vperm.xlu0 %338, %v40_v8   ;;  %v244_v17 = vld [vmem:[%s624_s3] sm:$0xff]  ;;  %v201_v18 = vld [vmem:[%s623_s2 + $0x30] sm:$0x3f]  ;;  %v245_v20 = vld [vmem:[%s624_s3 + $0x8] sm:$0xff] }
   0xf   :  { %v246_v19 = vld [vmem:[%s624_s3 + $0x10] sm:$0xff]  ;;  %v248_v21 = vld [vmem:[%s624_s3 + $0x20] sm:$0xff]  ;;  %v247_v22 = vld [vmem:[%s624_s3 + $0x18] sm:$0xff] }
  0x10   :  { %v250_v23 = vld [vmem:[%s624_s3 + $0x30] sm:$0x3f]  ;;  %v249_v24 = vld [vmem:[%s624_s3 + $0x28] sm:$0xff]  ;;  %v150_v25 = vld [vmem:[%s622_s1 + $0x20] sm:$0xff] }
  0x11   :  { %v149_v26 = vld [vmem:[%s622_s1 + $0x18] sm:$0xff]  ;;  %v152_v27 = vld [vmem:[%s622_s1 + $0x30] sm:$0x3f]  ;;  %v151_v28 = vld [vmem:[%s622_s1 + $0x28] sm:$0xff] }
  0x12   :  { %165 = vperm.xlu1 %339, %v148_v9   ;;  %160 = vperm.xlu0 %338, %v147_v10   ;;  %v29_v29 = vld [vmem:[%s627_s6 + $0x10] sm:$0xff]  ;;  %v27_v30 = vld [vmem:[%s627_s6] sm:$0xff]  ;;  %v28_v35 = vld [vmem:[%s627_s6 + $0x8] sm:$0xff] }
  0x13   :  { %v30_v41 = vld [vmem:[%s627_s6 + $0x18] sm:$0xff]  ;;  %v31_v43 = vld [vmem:[%s627_s6 + $0x20] sm:$0xff]  ;;  %v32_v47 = vld [vmem:[%s627_s6 + $0x28] sm:$0xff] }
  0x14   :  { %v33_v49 = vld [vmem:[%s627_s6 + $0x30] sm:$0x3f] }
  0x16   :  { %209 = vperm.xlu1 %339, %v196_v11   ;;  %204 = vperm.xlu0 %338, %v195_v12  }
  0x1a   :  { %219 = vperm.xlu1 %339, %v198_v13   ;;  %214 = vperm.xlu0 %338, %v197_v14   ;;  %v574_v13 = vld [vmem:[%s625_s4] ss:$0 sm:$0xff]  ;;  %s393_s4 = smov [#allocation2]  }
  0x1b   :  { %v333_v14 = vld [vmem:[%s626_s5] ss:$0 sm:$0xff]  ;;  %s321_s5 = sshll.u32 %s393_s4, 4  ;;  %s322_s5 = int_to_ptr.vmem [resolvable:$true] %s321_s5 }
  0x1c   :  { %s368_s22 = scalar_lea.vmem %s322_s5, 896  ;;  %p373_p1 = scmp.lt.s32.totalorder %s322_s5, %s322_s5 }
  0x1d   :  { %p369_p0 = scmp.ne.s32.totalorder %s322_s5, %s368_s22  ;;  %p374_p2 = scmp.lt.s32.totalorder %s368_s22, %s368_s22 }
  0x1e   :  { %229 = vperm.xlu1 %339, %v200_v15   ;;  %224 = vperm.xlu0 %338, %v199_v16  }
  0x1f   :  { %p375_p3 = por %p374_p2, %p373_p1 }
  0x21   :  { %p376_p4 = pnand %p375_p3, %p369_p0 }
  0x22   :  { %253 = vperm.xlu1 %339, %v244_v17   ;;  %234 = vperm.xlu0 %338, %v201_v18  }
  0x26   :  { %263 = vperm.xlu1 %339, %v246_v19   ;;  %258 = vperm.xlu0 %338, %v245_v20  }
  0x2a   :  { %273 = vperm.xlu1 %339, %v248_v21   ;;  %268 = vperm.xlu0 %338, %v247_v22  }
  0x2e   :  { %283 = vperm.xlu1 %339, %v250_v23   ;;  %278 = vperm.xlu0 %338, %v249_v24  }
  0x32   :  { %175 = vperm.xlu1 %339, %v150_v25   ;;  %170 = vperm.xlu0 %338, %v149_v26  }
  0x36   :  { %185 = vperm.xlu1 %339, %v152_v27   ;;  %180 = vperm.xlu0 %338, %v151_v28  }
  0x81   :  { %v526_v31 = vpop.permute.xlu1 %53  ;;  %v528_v32 = vpop.permute.xlu0 %43 }
  0x82   :  { %v78_v33 = vmul.f32 %v526_v31, %v29_v29  ;;  %v76_v34 = vmul.f32 %v528_v32, %v27_v30  ;;  %vm97_vm0 = vcmp.gt.f32.partialorder %v528_v32, 0.0  ;;  %vm99_vm1 = vcmp.gt.f32.partialorder %v526_v31, 0.0 }
  0x84   :  { %v87_v36 = vmul.f32 1.442695, %v78_v33  ;;  %v83_v37 = vmul.f32 1.442695, %v76_v34 }
  0x85   :  { %v535_v38 = vpop.permute.xlu1 %58  ;;  %v537_v39 = vpop.permute.xlu0 %48 }
  0x86   :  { %340 = vpow2.f32 %v87_v36  ;;  %v77_v40 = vmul.f32 %v537_v39, %v28_v35  ;;  %v79_v46 = vmul.f32 %v535_v38, %v30_v41  ;;  %vm98_vm3 = vcmp.gt.f32.partialorder %v537_v39, 0.0 }
  0x87   :  { %342 = vpow2.f32 %v83_v37  ;;  %vm100_vm4 = vcmp.gt.f32.partialorder %v535_v38, 0.0 }
  0x88   :  { %v85_v42 = vmul.f32 1.442695, %v77_v40  ;;  %v89_v53 = vmul.f32 1.442695, %v79_v46 }
  0x89   :  { %v546_v44 = vpop.permute.xlu1 %68  ;;  %v548_v45 = vpop.permute.xlu0 %63 }
  0x8a   :  { %344 = vpow2.f32 %v85_v42  ;;  %v80_v48 = vmul.f32 %v548_v45, %v31_v43  ;;  %v81_v50 = vmul.f32 %v546_v44, %v32_v47  ;;  %vm101_vm5 = vcmp.gt.f32.partialorder %v548_v45, 0.0 }
  0x8b   :  { %346 = vpow2.f32 %v89_v53  ;;  %vm102_vm6 = vcmp.gt.f32.partialorder %v546_v44, 0.0 }
  0x8c   :  { %v91_v55 = vmul.f32 1.442695, %v80_v48  ;;  %v93_v58 = vmul.f32 1.442695, %v81_v50 }
  0x8d   :  { %v156_v51 = vpop.permute.xlu1 %155  ;;  %v559_v52 = vpop.permute.xlu0 %73 }
  0x8e   :  { %v82_v54 = vmul.f32 %v559_v52, %v33_v49  ;;  %348 = vpow2.f32 %v91_v55  ;;  %vm103_vm7 = vcmp.gt.f32.partialorder %v559_v52, 0.0 }
  0x90   :  { %v341_v56 = vpop.eup %340  ;;  %v95_v62 = vmul.f32 1.442695, %v82_v54 }
  0x91   :  { %v343_v57 = vpop.eup %342  ;;  %v166_v59 = vpop.permute.xlu1 %165  ;;  %v106_v63 = vadd.f32 1.0, %v341_v56 }
  0x92   :  { %v161_v60 = vpop.permute.xlu0 %160  ;;  %v104_v61 = vadd.f32 1.0, %v343_v57 }
  0x94   :  { %350 = vrcp.f32 %v104_v61  ;;  %v345_v0 = vpop.eup %344 }
  0x95   :  { %352 = vpow2.f32 %v93_v58  ;;  %v210_v1 = vpop.permute.xlu1 %209  ;;  %v105_v3 = vadd.f32 1.0, %v345_v0  ;;  %v562_v6 = vpop.eup %346 }
  0x96   :  { %v205_v2 = vpop.permute.xlu0 %204  ;;  %354 = vpow2.f32 %v95_v62  ;;  %v107_v12 = vadd.f32 1.0, %v562_v6  ;;  %v238_v30 = vmul.f32 %v574_v13, %v210_v1 }
  0x97   :  { %356 = vrcp.f32 %v106_v63  ;;  %v237_v23 = vmul.f32 %v574_v13, %v205_v2 }
  0x98   :  { %358 = vrcp.f32 %v105_v3  ;;  %v564_v7 = vpop.eup %348 }
  0x99   :  { %v220_v4 = vpop.permute.xlu1 %219  ;;  %v108_v16 = vadd.f32 1.0, %v564_v7  ;;  %360 = vrcp.f32 %v107_v12 }
  0x9a   :  { %v215_v5 = vpop.permute.xlu0 %214  ;;  %v240_v55 = vmul.f32 %v574_v13, %v220_v4 }
  0x9b   :  { %362 = vrcp.f32 %v108_v16  ;;  %v239_v32 = vmul.f32 %v574_v13, %v215_v5 }
  0x9d   :  { %v566_v8 = vpop.permute.xlu1 %229 }
  0x9e   :  { %v225_v9 = vpop.permute.xlu0 %224  ;;  %v351_v10 = vpop.eup %350  ;;  %v242_v38 = vmul.f32 %v574_v13, %v566_v8 }
  0x9f   :  { %v568_v11 = vpop.eup %352  ;;  %v125_v18 = vsel %vm97_vm0, %v343_v57, %v351_v10 }
  0xa0   :  { %v579_v15 = vpop.eup %354  ;;  %v109_v22 = vadd.f32 1.0, %v568_v11  ;;  %v188_v26 = vmul.f32 %v156_v51, %v125_v18 }
  0xa1   :  { %v357_v17 = vpop.eup %356  ;;  %v254_v19 = vpop.permute.xlu1 %253  ;;  %v110_v25 = vadd.f32 1.0, %v579_v15 }
  0xa2   :  { %v235_v20 = vpop.permute.xlu0 %234  ;;  %v359_v21 = vpop.eup %358  ;;  %v286_v24 = vmul.f32 %v333_v14, %v254_v19  ;;  %v127_v28 = vsel %vm99_vm1, %v341_v56, %v357_v17  ;;  %364 = vrcp.f32 %v109_v22  ;;  %v241_v56 = vmul.f32 %v574_v13, %v225_v9 }
  0xa3   :  { %v126_v29 = vsel %vm98_vm3, %v345_v0, %v359_v21  ;;  %366 = vrcp.f32 %v110_v25  ;;  %v190_v37 = vmul.f32 %v166_v59, %v127_v28  ;;  %v361_v48 = vpop.eup %360  ;;  %v243_v45 = vmul.f32 %v574_v13, %v235_v20 }
  0xa4   :  { %v293_v27 = vadd.f32 %v286_v24, %v237_v23  ;;  %v189_v40 = vmul.f32 %v161_v60, %v126_v29  ;;  %v128_v0 = vsel %vm100_vm4, %v562_v6, %v361_v48 }
  0xa5   :  { %v264_v33 = vpop.permute.xlu1 %263  ;;  %v363_v54 = vpop.eup %362 }
  0xa6   :  { %v259_v34 = vpop.permute.xlu0 %258  ;;  %v300_v35 = vadd.f32 %v293_v27, %v188_v26  ;;  %v288_v31 = vmul.f32 %v333_v14, %v264_v33  ;;  %v129_v62 = vsel %vm101_vm5, %v564_v7, %v363_v54 }
  0xa7   :  { %v287_v36 = vmul.f32 %v333_v14, %v259_v34 }
  0xa8   :  { %308 = vst.msk [vmem:[#allocation2] sm:$0xff] %vm307_vm2, %v300_v35  ;;  %v295_v39 = vadd.f32 %v288_v31, %v239_v32 }
  0xa9   :  { %v294_v41 = vadd.f32 %v287_v36, %v238_v30  ;;  %v274_v42 = vpop.permute.xlu1 %273 }
  0xaa   :  { %v269_v43 = vpop.permute.xlu0 %268  ;;  %v302_v46 = vadd.f32 %v295_v39, %v190_v37  ;;  %v290_v49 = vmul.f32 %v333_v14, %v274_v42 }
  0xab   :  { %v301_v47 = vadd.f32 %v294_v41, %v189_v40  ;;  %v289_v50 = vmul.f32 %v333_v14, %v269_v43 }
  0xac   :  { %310 = vst.msk [vmem:[#allocation2 + $0x10] sm:$0xff] %vm307_vm2, %v302_v46  ;;  %v365_v57 = vpop.eup %364  ;;  %v297_v59 = vadd.f32 %v290_v49, %v241_v56 }
  0xad   :  { %309 = vst.msk [vmem:[#allocation2 + $0x8] sm:$0xff] %vm307_vm2, %v301_v47  ;;  %v284_v51 = vpop.permute.xlu1 %283  ;;  %v367_v58 = vpop.eup %366  ;;  %v296_v60 = vadd.f32 %v289_v50, %v240_v55  ;;  %v130_v6 = vsel %vm102_vm6, %v568_v11, %v365_v57 }
  0xae   :  { %v279_v53 = vpop.permute.xlu0 %278  ;;  %v292_v1 = vmul.f32 %v333_v14, %v284_v51  ;;  %v131_v7 = vsel %vm103_vm7, %v579_v15, %v367_v58 }
  0xaf   :  { %v291_v2 = vmul.f32 %v333_v14, %v279_v53 }
  0xb0   :  { %v299_v14 = vadd.f32 %v292_v1, %v243_v45 }
  0xb1   :  { %v176_v61 = vpop.permute.xlu1 %175  ;;  %v298_v16 = vadd.f32 %v291_v2, %v242_v38 }
  0xb2   :  { %v171_v63 = vpop.permute.xlu0 %170  ;;  %v192_v3 = vmul.f32 %v176_v61, %v129_v62 }
  0xb3   :  { %v191_v4 = vmul.f32 %v171_v63, %v128_v0 }
  0xb4   :  { %v304_v5 = vadd.f32 %v297_v59, %v192_v3 }
  0xb5   :  { %v303_v9 = vadd.f32 %v296_v60, %v191_v4  ;;  %v186_v10 = vpop.permute.xlu1 %185 }
  0xb6   :  { %v181_v12 = vpop.permute.xlu0 %180  ;;  %312 = vst.msk [vmem:[#allocation2 + $0x20] sm:$0xff] %vm307_vm2, %v304_v5  ;;  %v194_v44 = vmul.f32 %v186_v10, %v131_v7 }
  0xb7   :  { %311 = vst.msk [vmem:[#allocation2 + $0x18] sm:$0xff] %vm307_vm2, %v303_v9  ;;  %v193_v52 = vmul.f32 %v181_v12, %v130_v6 }
  0xb8   :  { %v306_v8 = vadd.f32 %v299_v14, %v194_v44 }
  0xb9   :  { %v305_v13 = vadd.f32 %v298_v16, %v193_v52 }
  0xba   :  { %315 = vst.msk [vmem:[#allocation2 + $0x30] sm:$0x3f] %vm314_vm8, %v306_v8 }
  0xbb   :  { %313 = vst.msk [vmem:[#allocation2 + $0x28] sm:$0xff] %vm307_vm2, %v305_v13 }
  0xbc   :  { %379 = shalt.err (!%p376_p4)
}
  0xbd   :  { %s380_s0 = scalar_lea.hbm %s628_s7, 896 }
  0xbe   :  { %p381_p5 = scmp.ne.s32.totalorder %s628_s7, %s380_s0  ;;  %p384_p6 = scmp.lt.u32.totalorder %s380_s0, %s628_s7 }
  0xc0   :  { %p386_p7 = pnand %p384_p6, %p381_p5 }
  0xc2   :  { %389 = shalt.err (!%p386_p7)
}
  0xc3   :  { %s394_s29 = smov 128   ;;  %s395_s30 = smov 8  }
  0xc4   :  { %327 = dma.vmem_to_hbm [thread:$0]  %s322_s5, 896, %s628_s7, [#allocation3], %s394_s29, %s394_s29, %s395_s30  }
  0xc5   :  { %390 = dma.done.wait [#allocation3], 896  }
  0xc6   :  { %391 = vsyncadd [#allocation3], 4294966400 }
  0xc7   :  { %331 = vsyncpa [#allocation3], 1 }

</bundles_post_ra>
